<compile_context>
chip_gen: v6e
topology: v6e:2x2x1
jax: 0.10.0
libtpu: 0.0.40
codegen_flags: <defaults>
</compile_context>

<pallas_src>
import functools

import jax
import jax.numpy as jnp
import numpy as np
from jax import lax
from jax.experimental import pallas as pl
from jax.experimental.pallas import tpu as pltpu


def _round_up(v, m):
    return ((v + m - 1) // m) * m


# --------------------------------------------------------------------------
# Kernel 1: x_target = relu(x @ W^T + b), lane-dense padded feature dim,
#           with a constant 1.0 column at index `d` (used to fuse row_sum).
# --------------------------------------------------------------------------
def _linear_relu_kernel(x_ref, wt_ref, b_ref, xt_ref):
    acc = jnp.dot(x_ref[...], wt_ref[...], preferred_element_type=jnp.float32)
    xt_ref[...] = jnp.maximum(acc + b_ref[...], 0.0).astype(xt_ref.dtype)


# --------------------------------------------------------------------------
# Kernel 2: weighted-adjacency aggregation, gridded over (node_tile, edge_tile)
#   adj[n, m]  = sum_e ew[e] * [src[e] == n] * [tgt[e] == m]        (per tile)
#   acc[n, :] += adj @ x_target                                     (f32 acc)
#   row_sum    = acc[:, ones_col]  (falls out of the ones column of x_target)
#   out        = acc * reciprocal(max(row_sum, 1))
# --------------------------------------------------------------------------
def _agg_kernel(src_ref, tgt_ref, ew_ref, xt_ref, out_ref, acc_ref, *, ones_col):
    j = pl.program_id(1)
    tn = acc_ref.shape[0]
    n_pad = xt_ref.shape[0]
    te = src_ref.shape[1]

    @pl.when(j == 0)
    def _():
        acc_ref[...] = jnp.zeros_like(acc_ref)

    src = src_ref[...]                                            # [1, TE] int32
    tgt = tgt_ref[...]                                            # [1, TE] int32
    ew = ew_ref[...]                                              # [1, TE] f32

    # Scatter one-hot, pre-weighted by edge weight: [TN, TE]
    row_ids = lax.broadcasted_iota(jnp.int32, (tn, te), 0) + pl.program_id(0) * tn
    scatter_w = jnp.where(src == row_ids, ew, 0.0).astype(jnp.bfloat16)

    # Gather one-hot, built already transposed (nodes on sublanes): [N_pad, TE]
    node_ids = lax.broadcasted_iota(jnp.int32, (n_pad, te), 0)
    gather_t = (tgt == node_ids).astype(jnp.bfloat16)

    # Weighted adjacency block [TN, N_pad]: contract both on the edge (lane) axis
    # -> rhs-transposed matmul, MXU-native, no XLU transpose needed.
    adj = lax.dot_general(scatter_w, gather_t,
                          (((1,), (1,)), ((), ())),
                          preferred_element_type=jnp.float32)

    # Fused aggregation; the ones column of xt makes acc[:, ones_col] = row_sum.
    acc_ref[...] += jnp.dot(adj.astype(jnp.bfloat16), xt_ref[...],
                            preferred_element_type=jnp.float32)

    @pl.when(j == pl.num_programs(1) - 1)
    def _():
        acc = acc_ref[...]
        row_sum = jnp.maximum(acc[:, ones_col:ones_col + 1], 1.0)   # [TN, 1]
        out_ref[...] = acc * pl.reciprocal(row_sum, approx=True)


# --------------------------------------------------------------------------
# Wrapper
# --------------------------------------------------------------------------
def neigh_agg(x, edge_index, num_node, edge_weight, weight, bias, *, tn=256, te=512):
    n, d = x.shape
    assert num_node == n
    assert tn % 8 == 0 and te % 128 == 0
    e = edge_index.shape[1]

    d_pad = _round_up(d + 1, 128)          # +1 reserves the "ones" column at index d
    n_pad = _round_up(n, tn)
    e_pad = _round_up(e, te)
    n_tiles = n_pad // tn
    e_tiles = e_pad // te

    # ---- padded, lane-dense operands -------------------------------------
    x_p = jnp.zeros((n_pad, d_pad), jnp.bfloat16).at[:n, :d].set(x.astype(jnp.bfloat16))
    wt_p = jnp.zeros((d_pad, d_pad), jnp.bfloat16).at[:d, :d].set(
        weight.T.astype(jnp.bfloat16))                 # Linear applies x @ W^T
    b_p = jnp.zeros((1, d_pad), jnp.float32).at[0, :d].set(bias.astype(jnp.float32))
    b_p = b_p.at[0, d].set(1.0)                        # ones column -> fused row_sum

    # Edge arrays lane-major [1, E_pad]; padded edges get src/tgt = -1, ew = 0
    src = jnp.full((1, e_pad), -1, jnp.int32).at[0, :e].set(edge_index[0].astype(jnp.int32))
    tgt = jnp.full((1, e_pad), -1, jnp.int32).at[0, :e].set(edge_index[1].astype(jnp.int32))
    ew = jnp.zeros((1, e_pad), jnp.float32).at[0, :e].set(edge_weight.astype(jnp.float32))

    vmem_limit = 32 * 1024 * 1024          # safe for v5e/v6e and v7x (64 MiB phys)

    # ---- kernel 1: x_target = relu(x @ W^T + b) ---------------------------
    xt = pl.pallas_call(
        _linear_relu_kernel,
        out_shape=jax.ShapeDtypeStruct((n_pad, d_pad), jnp.bfloat16),
        grid_spec=pltpu.PrefetchScalarGridSpec(
            num_scalar_prefetch=0,
            grid=(n_tiles,),
            in_specs=[pl.BlockSpec((tn, d_pad), lambda i: (i, 0)),
                      pl.BlockSpec((d_pad, d_pad), lambda i: (0, 0)),
                      pl.BlockSpec((1, d_pad), lambda i: (0, 0))],
            out_specs=pl.BlockSpec((tn, d_pad), lambda i: (i, 0)),
        ),
        compiler_params=pltpu.CompilerParams(
            dimension_semantics=("parallel",),
            vmem_limit_bytes=vmem_limit),
    )(x_p, wt_p, b_p)

    # ---- kernel 2: gridded weighted aggregation + fused row_sum ----------
    flops = 2 * n_tiles * e_tiles * (tn * te * n_pad + tn * n_pad * d_pad)
    bytes_accessed = (3 * e_pad * 4 * n_tiles            # src/tgt/ew per node tile
                      + n_pad * d_pad * 2                # x_target (bf16)
                      + n_pad * d_pad * 4)               # output (f32)

    out_p = pl.pallas_call(
        functools.partial(_agg_kernel, ones_col=d),
        out_shape=jax.ShapeDtypeStruct((n_pad, d_pad), jnp.float32),
        grid_spec=pltpu.PrefetchScalarGridSpec(
            num_scalar_prefetch=0,
            grid=(n_tiles, e_tiles),
            in_specs=[pl.BlockSpec((1, te), lambda i, j: (0, j)),       # src
                      pl.BlockSpec((1, te), lambda i, j: (0, j)),       # tgt
                      pl.BlockSpec((1, te), lambda i, j: (0, j)),       # ew
                      pl.BlockSpec((n_pad, d_pad), lambda i, j: (0, 0))],  # xt resident
            out_specs=pl.BlockSpec((tn, d_pad), lambda i, j: (i, 0)),
            scratch_shapes=[pltpu.VMEM((tn, d_pad), jnp.float32)],
        ),
        compiler_params=pltpu.CompilerParams(
            dimension_semantics=("parallel", "arbitrary"),
            vmem_limit_bytes=vmem_limit),
        cost_estimate=pl.CostEstimate(
            flops=flops, transcendentals=n_pad, bytes_accessed=bytes_accessed),
    )(src, tgt, ew, xt)

    return out_p[:n, :d]


# --------------------------------------------------------------------------
# Pure-JAX f32 reference
# --------------------------------------------------------------------------
def _reference(x, edge_index, num_node, edge_weight, weight, bias):
    xt = jax.nn.relu(x @ weight.T + bias)
    src, tgt = edge_index[0], edge_index[1]
    xw = xt[tgt] * edge_weight[:, None]
    aggr = jnp.zeros((num_node, x.shape[1]), jnp.float32).at[src].add(xw)
    rs = jnp.zeros((num_node,), jnp.float32).at[src].add(edge_weight)
    rs = jnp.maximum(rs, 1.0)
    return aggr / rs[:, None]


if __name__ == "__main__":
    key = jax.random.PRNGKey(0)
    kx, kw, kb, ke, kew = jax.random.split(key, 5)

    # Small but non-trivial: 2 node tiles x 3 edge tiles with tn=64, te=128.
    num_node, embed_dim, num_edges = 112, 32, 300
    x = jax.random.normal(kx, (num_node, embed_dim), jnp.float32)
    weight = jax.random.normal(kw, (embed_dim, embed_dim), jnp.float32) * 0.1
    bias = jax.random.normal(kb, (embed_dim,), jnp.float32) * 0.1
    edge_index = jax.random.randint(ke, (2, num_edges), 0, num_node, jnp.int32)
    edge_weight = jax.random.uniform(kew, (num_edges,), jnp.float32)

    out = neigh_agg(x, edge_index, num_node, edge_weight, weight, bias, tn=64, te=128)
    out = jax.block_until_ready(out)

    ref = _reference(x, edge_index, num_node, edge_weight, weight, bias)
    # bf16 MXU operands (f32 accumulation) -> ~1e-2 relative deviation expected.
    np.testing.assert_allclose(np.asarray(out), np.asarray(ref), rtol=3e-2, atol=3e-2)
    print("KERNEL_OK")
</pallas_src>

<mosaic_0001>
module attributes {stable_mosaic.version = 11 : i64} {
  func.func @_linear_relu_kernel(%arg0: i32, %arg1: memref<64x128xbf16, #tpu.memory_space<vmem>>, %arg2: memref<128x128xbf16, #tpu.memory_space<vmem>>, %arg3: memref<1x128xf32, #tpu.memory_space<vmem>>, %arg4: memref<64x128xbf16, #tpu.memory_space<vmem>>) attributes {dimension_semantics = [#tpu.dimension_semantics<parallel>], iteration_bounds = array<i64: 2>, scalar_prefetch = 0 : i64, scratch_operands = 0 : i64, tpu.core_type = #tpu.core_type<tc>, window_params = [{transform_indices = @transform_0, window_bounds = array<i64: 64, 128>}, {pipeline_mode = #tpu.pipeline_mode<synchronous>, transform_indices = @transform_1, window_bounds = array<i64: 128, 128>}, {pipeline_mode = #tpu.pipeline_mode<synchronous>, transform_indices = @transform_2, window_bounds = array<i64: 1, 128>}, {transform_indices = @transform_3, window_bounds = array<i64: 64, 128>}]} {
    %c0 = arith.constant 0 : index
    %c0_0 = arith.constant 0 : index
    %0 = vector.load %arg1[%c0, %c0_0] : memref<64x128xbf16, #tpu.memory_space<vmem>>, vector<64x128xbf16>
    %c0_1 = arith.constant 0 : index
    %c0_2 = arith.constant 0 : index
    %1 = vector.load %arg2[%c0_1, %c0_2] : memref<128x128xbf16, #tpu.memory_space<vmem>>, vector<128x128xbf16>
    %cst = arith.constant dense<0.000000e+00> : vector<64x128xf32>
    %2 = tpu.matmul %0, %1, %cst {dimension_numbers = #tpu.dot_dimension_numbers<[1], [0], [0], [1], [0, 0, 1, 1], [], []>} : vector<64x128xbf16>, vector<128x128xbf16>, vector<64x128xf32> -> vector<64x128xf32>
    %c0_3 = arith.constant 0 : index
    %c0_4 = arith.constant 0 : index
    %3 = vector.load %arg3[%c0_3, %c0_4] : memref<1x128xf32, #tpu.memory_space<vmem>>, vector<1x128xf32>
    %4 = vector.broadcast %3 : vector<1x128xf32> to vector<64x128xf32>
    %5 = arith.addf %2, %4 : vector<64x128xf32>
    %cst_5 = arith.constant 0.000000e+00 : f32
    %6 = vector.broadcast %cst_5 : f32 to vector<64x128xf32>
    %7 = arith.maximumf %5, %6 : vector<64x128xf32>
    %8 = arith.truncf %7 : vector<64x128xf32> to vector<64x128xbf16>
    %c0_6 = arith.constant 0 : index
    %c0_7 = arith.constant 0 : index
    %9 = vector.load %arg4[%c0_6, %c0_7] : memref<64x128xbf16, #tpu.memory_space<vmem>>, vector<64x128xbf16>
    tpu.vector_store %arg4[%c0_6, %c0_7], %8 {strides = array<i32>} : memref<64x128xbf16, #tpu.memory_space<vmem>>, vector<64x128xbf16>,
    return
  }
  func.func @transform_0(%arg0: i32) -> (i32, i32) {
    %c0_i32 = arith.constant 0 : i32
    %c0_i32_0 = arith.constant 0 : i32
    return %arg0, %c0_i32 : i32, i32
  }
  func.func @transform_1(%arg0: i32) -> (i32, i32) {
    %c0_i32 = arith.constant 0 : i32
    %c0_i32_0 = arith.constant 0 : i32
    %c0_i32_1 = arith.constant 0 : i32
    return %c0_i32, %c0_i32_0 : i32, i32
  }
  func.func @transform_2(%arg0: i32) -> (i32, i32) {
    %c0_i32 = arith.constant 0 : i32
    %c0_i32_0 = arith.constant 0 : i32
    %c0_i32_1 = arith.constant 0 : i32
    return %c0_i32, %c0_i32_0 : i32, i32
  }
  func.func @transform_3(%arg0: i32) -> (i32, i32) {
    %c0_i32 = arith.constant 0 : i32
    %c0_i32_0 = arith.constant 0 : i32
    return %arg0, %c0_i32 : i32, i32
  }
}

</mosaic_0001>

<bundles_post_ra>
// kernel: tpu_custom_call.1
= control target key start
LH: loop header
LB: loop body
LE: loop exit
PB: predicated region body
PF: predicated region fallthrough
CT: control target
= control target key end

     0   :  { %8 = vsyncpa [#allocation3], 0  ;;  %s1062_s0 = inlined_call_operand.hbm [shape: bf16[128,128], index: 0, kind: input, shape index: {}]   ;;  %s1063_s1 = inlined_call_operand.hbm [shape: bf16[128,128], index: 1, kind: input, shape index: {}]   ;;  %s1064_s2 = inlined_call_operand.vmem [shape: f32[1,128], index: 2, kind: input, shape index: {}]   ;;  %s1065_s3 = inlined_call_operand.hbm [shape: bf16[128,128], index: 3, kind: output, shape index: {}]  }
   0x1   :  { %10 = vsyncpa [#allocation3 + $0x1], 0 }
   0x2   :  { %11 = vsyncpa [#allocation6], 0 }
   0x3   :  { %12 = vsyncpa [#allocation4], 0 }
   0x4   :  { %14 = vsyncpa [#allocation4 + $0x1], 0  ;;  %s866_s12 = smov 0   ;;  %s868_s13 = smov 0  }
   0x5   :  { %s870_s14 = smov 0   ;;  %s872_s15 = smov 0  }
   0x6 LB: > { %s887_s16 = sadd.s32 4294967295, %s837_s15   ;;  %s520_s17 = sadd.s32 4294967294, %s837_s15   ;;  %s837_s15 = sphi %s872_s15, %s1087_s15   ;;  %s833_s14 = sphi %s870_s14, %s1086_s14   ;;  %s829_s13 = sphi %s868_s13, %s1085_s13   ;;  %s825_s12 = sphi %s866_s12, %s1084_s12  }
   0x7   : > { %p40_p0 = scmp.ne.s32.totalorder %s829_s13, %s825_s12  ;;  %p1066_p1 = scmp.eq.s32.totalorder %s887_s16, 0 }
   0x8   : > { %p112_p3 = scmp.eq.s32.totalorder %s520_s17, 1  ;;  %p521_p5 = scmp.ge.s32.totalorder %s837_s15, 1 }
   0x9   : > { %p896_p4 = por %p1066_p1, %p40_p0  ;;  %p119_p7 = scmp.lt.s32.totalorder %s837_s15, 3 }
   0xa   : > { %p901_p6 = por %p112_p3, %p40_p0  ;;  %s839_s21 = smov [#allocation5]  }
   0xb   : > { %s1070_s18 = scalar_select %p896_p4, 1, 0 }
   0xc   : > { %s1071_s19 = scalar_select %p901_p6, 1, 0 }
   0xd   : > { %p906_p8 = pnand %p521_p5, %p119_p7  ;;  %s131_s22 = sshll.u32 %s839_s21, 4  ;;  %s132_s22 = int_to_ptr.vmem [resolvable:$true] %s131_s22 }
   0xe   : > { %s920_s24 = sadd.s32 1, %s837_s15   ;;  %s27_s25 = sadd.s32 1, %s833_s14 }
   0xf   : > { %s1072_s20 = scalar_select %p906_p8, 1, 0 }
  0x10   : > { %p650_p9 = pneg %p906_p8  ;;  %s24_s26 = ssub.s32 %s837_s15, %s920_s24 }
  0x11   : > { %s726_s27 = scalar_lea.vmem %s132_s22, 1024  ;;  %p734_p5 = scmp.lt.s32.totalorder %s132_s22, %s132_s22 }
  0x12   : > { %p915_p11 = pnand %p650_p9, %p1066_p1  ;;  %p727_p13 = scmp.ne.s32.totalorder %s132_s22, %s726_s27 }
  0x13   : > { %p735_p7 = scmp.lt.s32.totalorder %s726_s27, %s726_s27 }
  0x14   : > { %p717_p12 = pneg %p915_p11 }
  0x15   : > { %p736_p10 = por %p735_p7, %p734_p5 }
  0x16   : > { %p729_p0 = pnand %p727_p13, %p717_p12 }
  0x18   : > { %p730_p3 = pneg %p729_p0 }
  0x1a   : > { %p737_p2 = pnand %p736_p10, %p730_p3 }
  0x1c   : > { %740 = shalt.err (!%p737_p2)
}
  0x1d   : > { %s840_s28 = smov 64   ;;  %s841_s29 = smov 4  }
  0x1e   : > { %653 = dma.hbm_to_vmem [thread:$0]  (!%p915_p11), %s1063_s1, 1024, %s132_s22, [#allocation6], %s840_s28, %s840_s28, %s841_s29  }
  0x1f   : > { %p25_p2 = scmp.eq.s32.totalorder %s24_s26, 0  ;;  %p34_p9 = scmp.ne.s32.totalorder %s833_s14, %s829_s13 }
  0x20   : > { %p35_p10 = scmp.eq.s32.totalorder %s837_s15, 0  ;;  %p663_p12 = scmp.lt.s32.totalorder %s837_s15, 2 }
  0x21   : > { %s940_s5 = scalar_select %p25_p2, %s833_s14, %s27_s25  }
  0x22   : > { %p36_p13 = por %p35_p10, %p34_p9  ;;  %p1074_p0 = scmp.eq.s32.totalorder %s887_s16, 1 }
  0x23   : > { %s148_s7 = sand.u32 1, %s833_s14   ;;  %s557_s8 = sshll.u32 %s837_s15, 9 }
  0x24   : > { %p944_p3 = por %p1074_p0, %p34_p9  ;;  %s524_s9 = sshll.u32 %s148_s7, 5 }
  0x25   : > { %s953_s17 = scalar_lea.hbm %s1062_s0, %s557_s8  ;;  %s152_s21 = scalar_lea.vmem [#allocation2], %s524_s9 }
  0x26   : > { %s1075_s6 = scalar_select %p944_p3, 1, 0 }
  0x27   : > { %s159_s22 = sshll.u32 %s152_s21, 4  ;;  %p955_p11 = pnand %p663_p12, %p36_p13  ;;  %s959_s22 = int_to_ptr.vmem [resolvable:$true] %s159_s22 }
  0x28   : > { %s961_s25 = scalar_lea.sflag [#allocation3], %s148_s7  ;;  %s741_s26 = scalar_lea.hbm %s953_s17, 512 }
  0x29   : > { %p742_p5 = scmp.ne.s32.totalorder %s953_s17, %s741_s26  ;;  %p743_p7 = pneg %p955_p11 }
  0x2a   : > { %s746_s4 = scalar_lea.hbm %s1062_s0, 1024  ;;  %p747_p10 = scmp.lt.s32.totalorder %s953_s17, %s1062_s0 }
  0x2b   : > { %p744_p2 = pnand %p743_p7, %p742_p5  ;;  %p748_p12 = scmp.lt.s32.totalorder %s746_s4, %s741_s26 }
  0x2d   : > { %p745_p9 = pneg %p744_p2  ;;  %p749_p13 = por %p748_p12, %p747_p10 }
  0x2f   : > { %p750_p0 = pnand %p749_p13, %p745_p9 }
  0x31   : > { %753 = shalt.err (!%p750_p0)
}
  0x32   : > { %s754_s7 = scalar_lea.vmem %s959_s22, 512  ;;  %s842_s10 = smov [#allocation2]  }
  0x33   : > { %p755_p1 = scmp.ne.s32.totalorder %s959_s22, %s754_s7  ;;  %s759_s11 = sshll.u32 %s842_s10, 4  ;;  %s760_s11 = int_to_ptr.vmem [resolvable:$false] %s759_s11 }
  0x34   : > { %s761_s21 = scalar_lea.vmem %s760_s11, 1024  ;;  %p762_p2 = scmp.lt.s32.totalorder %s959_s22, %s760_s11 }
  0x35   : > { %p757_p6 = pnand %p755_p1, %p743_p7  ;;  %p763_p3 = scmp.lt.s32.totalorder %s761_s21, %s754_s7 }
  0x37   : > { %p758_p5 = pneg %p757_p6  ;;  %p764_p4 = por %p763_p3, %p762_p2 }
  0x39   : > { %p765_p8 = pnand %p764_p4, %p758_p5 }
  0x3b   : > { %768 = shalt.err (!%p765_p8)
}
  0x3c   : > { %657 = dma.hbm_to_vmem [thread:$0]  (!%p955_p11), %s953_s17, 512, %s959_s22, %s961_s25, %s840_s28, %s840_s28, %s841_s29  }
  0x3d   : > { %p1077_p1 = scmp.ne.s32.totalorder %s1072_s20, 0 }
  0x3e   : > { %s988_s26 = sand.u32 (!%p1077_p1), 1, %s829_s13   ;;  %p1078_p4 = scmp.ne.s32.totalorder (!%p1077_p1), %s1070_s18, 0 }
  0x3f   : > { %171 = sbr.rel (%p1077_p1) target bundleno = 324 (0x144), region = 32  ;;  %s528_s27 = sshll.u32 (!%p1077_p1), %s988_s26, 5 }
  0x40   : > { %s174_s30 = scalar_lea.sflag (!%p1077_p1), [#allocation3], %s988_s26  ;;  %s994_s23 = scalar_lea.vmem (!%p1077_p1), [#allocation2], %s528_s27 }
  0x44   : > { %812 = dma.done.wait (%p1078_p4), %s174_s30, 512  }
  0x45   : > { %814 = vsyncadd (%p1078_p4), %s174_s30, 4294966784  ;;  %p1079_p6 = scmp.eq.s32.totalorder %s887_s16, 0 }
  0x47   : > { %816 = dma.done.wait (%p1079_p6), [#allocation6], 1024   ;;  %p1080_p8 = pmov %p1079_p6 }
  0x48   : > { %v703_v0 = vld [vmem:[#allocation5 + $0x38] sm:$0xff]   ;;  %v704_v1 = vld [vmem:[#allocation5 + $0x30] sm:$0xff]   ;;  %v705_v2 = vld [vmem:[#allocation5 + $0x28] sm:$0xff]   ;;  %s203_s28 = scalar_lea.vmem [#allocation7], %s528_s27  ;;  %s566_s17 = sshll.u32 %s887_s16, 9 }
  0x49   : > { %818 = vsyncadd (%p1080_p8), [#allocation6], 4294966272  ;;  %602 = vmatprep.subr.bf16.mxu0 %v703_v0  ;;  %626 = vmatprep.subr.bf16.mxu1 %v703_v0  ;;  %v706_v3 = vld [vmem:[#allocation5 + $0x20] sm:$0xff]   ;;  %v712_v5 = vld [vmem:[%s994_s23 + $0x10] sm:$0xff]   ;;  %s437_s29 = sshll.u32 %s203_s28, 4  ;;  %s1019_s4 = scalar_lea.hbm %s1065_s3, %s566_s17  ;;  %s1014_s29 = int_to_ptr.vmem [resolvable:$true] %s437_s29 }
  0x4a   : > { %603 = vmatpush3.bf16.msra.mxu0 %v703_v0  ;;  %634 = vmatpush3.bf16.msra.mxu1 %v703_v0  ;;  %v711_v4 = vld [vmem:[%s994_s23] sm:$0xff]   ;;  %v707_v6 = vld [vmem:[#allocation5 + $0x18] sm:$0xff]   ;;  %v708_v7 = vld [vmem:[#allocation5 + $0x10] sm:$0xff]   ;;  %s424_s16 = scalar_lea.sflag [#allocation4], %s988_s26  ;;  %s769_s8 = scalar_lea.vmem %s1014_s29, 512 }
  0x4b   : > { %604 = vmatprep.subr.bf16.mxu0 %v704_v1  ;;  %627 = vmatprep.subr.bf16.mxu1 %v704_v1  ;;  %v709_v8 = vld [vmem:[#allocation5 + $0x8] sm:$0xff]   ;;  %v710_v9 = vld [vmem:[#allocation5] sm:$0xff]   ;;  %v714_v11 = vld [vmem:[%s994_s23 + $0x18] sm:$0xff]   ;;  %p770_p3 = scmp.ne.s32.totalorder %s1014_s29, %s769_s8  ;;  %p1081_p11 = scmp.ne.s32.totalorder %s1075_s6, 0 }
  0x4c   : > { %618 = vmatprep.mubr.bf16.mxu0 %v711_v4  ;;  %622 = vmatprep.mubr.bf16.mxu1 %v712_v5  ;;  %v713_v10 = vld [vmem:[%s994_s23 + $0x8] sm:$0xff]   ;;  %v531_v12 = vld [vmem:[%s1064_s2] ss:$0 sm:$0xff]  ;;  %s843_s9 = smov [#allocation7]  }
  0x4d   : > { %p771_p7 = pnand %p770_p3, %p1081_p11  ;;  %s773_s7 = sshll.u32 %s843_s9, 4  ;;  %s774_s7 = int_to_ptr.vmem [resolvable:$false] %s773_s7 }
  0x4e   : > { %605 = vmatpush3.bf16.msra.mxu0 %v704_v1  ;;  %635 = vmatpush3.bf16.msra.mxu1 %v704_v1  ;;  %s775_s10 = scalar_lea.vmem %s774_s7, 1024  ;;  %p776_p10 = scmp.lt.s32.totalorder %s1014_s29, %s774_s7 }
  0x4f   : > { %606 = vmatprep.subr.bf16.mxu0 %v705_v2  ;;  %628 = vmatprep.subr.bf16.mxu1 %v705_v2  ;;  %p772_p9 = pneg %p771_p7  ;;  %p777_p12 = scmp.lt.s32.totalorder %s775_s10, %s769_s8 }
  0x51   : > { %p778_p13 = por %p777_p12, %p776_p10 }
  0x52   : > { %607 = vmatpush3.bf16.msra.mxu0 %v705_v2  ;;  %636 = vmatpush3.bf16.msra.mxu1 %v705_v2 }
  0x53   : > { %608 = vmatprep.subr.bf16.mxu0 %v706_v3  ;;  %629 = vmatprep.subr.bf16.mxu1 %v706_v3  ;;  %p779_p0 = pnand %p778_p13, %p772_p9 }
  0x56   : > { %609 = vmatpush3.bf16.msra.mxu0 %v706_v3  ;;  %637 = vmatpush3.bf16.msra.mxu1 %v706_v3 }
  0x57   : > { %610 = vmatprep.subr.bf16.mxu0 %v707_v6  ;;  %630 = vmatprep.subr.bf16.mxu1 %v707_v6 }
  0x5a   : > { %611 = vmatpush3.bf16.msra.mxu0 %v707_v6  ;;  %638 = vmatpush3.bf16.msra.mxu1 %v707_v6 }
  0x5b   : > { %612 = vmatprep.subr.bf16.mxu0 %v708_v7  ;;  %631 = vmatprep.subr.bf16.mxu1 %v708_v7 }
  0x5e   : > { %613 = vmatpush3.bf16.msra.mxu0 %v708_v7  ;;  %639 = vmatpush3.bf16.msra.mxu1 %v708_v7 }
  0x5f   : > { %614 = vmatprep.subr.bf16.mxu0 %v709_v8  ;;  %632 = vmatprep.subr.bf16.mxu1 %v709_v8 }
  0x62   : > { %615 = vmatpush3.bf16.msra.mxu0 %v709_v8  ;;  %640 = vmatpush3.bf16.msra.mxu1 %v709_v8 }
  0x63   : > { %616 = vmatprep.subr.bf16.mxu0 %v710_v9  ;;  %633 = vmatprep.subr.bf16.mxu1 %v710_v9 }
  0x66   : > { %617 = vmatpush3.bf16.msra.mxu0 %v710_v9  ;;  %641 = vmatpush3.bf16.msra.mxu1 %v710_v9 }
  0x69   : > { %619 = vmatmul.mubr.bf16.vlgmr.msra.gmra.mxu0 %v713_v10  ;;  %623 = vmatmul.mubr.bf16.vlgmr.msra.gmra.mxu1 %v714_v11 }
 0x129   : > { %v620_v13 = vpop.f32.mrf.mxu0  ;;  %v624_v14 = vpop.f32.mrf.mxu1 }
 0x12a   : > { %v353_v15 = vadd.f32 %v620_v13, %v531_v12  ;;  %v369_v16 = vadd.f32 %v624_v14, %v531_v12 }
 0x12b   : > { %v344_v17 = vpop.f32.mrf.mxu0  ;;  %v360_v18 = vpop.f32.mrf.mxu1 }
 0x12c   : > { %v345_v19 = vadd.f32 %v531_v12, %v344_v17  ;;  %v361_v20 = vadd.f32 %v531_v12, %v360_v18  ;;  %v377_v25 = vmax.f32 %v353_v15, 0.0  ;;  %v381_v26 = vmax.f32 %v369_v16, 0.0 }
 0x12d   : > { %v621_v21 = vpop.f32.mrf.mxu0  ;;  %v625_v22 = vpop.f32.mrf.mxu1 }
 0x12e   : > { %v356_v23 = vadd.f32 %v621_v21, %v531_v12  ;;  %v372_v24 = vadd.f32 %v625_v22, %v531_v12  ;;  %v375_v33 = vmax.f32 %v345_v19, 0.0  ;;  %v379_v34 = vmax.f32 %v361_v20, 0.0 }
 0x12f   : > { %v347_v27 = vpop.f32.mrf.mxu0  ;;  %v363_v28 = vpop.f32.mrf.mxu1 }
 0x130   : > { %v378_v29 = vmax.f32 %v356_v23, 0.0  ;;  %v382_v30 = vmax.f32 %v372_v24, 0.0  ;;  %v348_v31 = vadd.f32 %v531_v12, %v347_v27  ;;  %v364_v32 = vadd.f32 %v531_v12, %v363_v28 }
 0x132   : > { %v575_v35 = vpack.c.bf16 %v378_v29, %v377_v25  ;;  %v585_v36 = vpack.c.bf16 %v382_v30, %v381_v26  ;;  %v376_v37 = vmax.f32 %v348_v31, 0.0  ;;  %v380_v38 = vmax.f32 %v364_v32, 0.0 }
 0x134   : > { %587 = vst [vmem:[%s203_s28 + $0x8] sm:$0xff] %v575_v35   ;;  %589 = vst [vmem:[%s203_s28 + $0x18] sm:$0xff] %v585_v36   ;;  %v570_v39 = vpack.c.bf16 %v376_v37, %v375_v33  ;;  %v580_v40 = vpack.c.bf16 %v380_v38, %v379_v34 }
 0x136   : > { %571 = vst [vmem:[%s203_s28] sm:$0xff] %v570_v39   ;;  %588 = vst [vmem:[%s203_s28 + $0x10] sm:$0xff] %v580_v40  }
 0x137   : > { %782 = shalt.err (!%p779_p0)
}
 0x138   : > { %s783_s11 = scalar_lea.hbm %s1019_s4, 512  ;;  %s787_s30 = scalar_lea.hbm %s1065_s3, 1024 }
 0x139   : > { %p784_p5 = scmp.ne.s32.totalorder %s1019_s4, %s783_s11  ;;  %p788_p4 = scmp.lt.s32.totalorder %s1019_s4, %s1065_s3 }
 0x13a   : > { %p789_p6 = scmp.lt.s32.totalorder %s787_s30, %s783_s11 }
 0x13b   : > { %p785_p2 = pnand %p784_p5, %p1081_p11 }
 0x13c   : > { %p790_p8 = por %p789_p6, %p788_p4 }
 0x13d   : > { %p786_p1 = pneg %p785_p2 }
 0x13f   : > { %p791_p3 = pnand %p790_p8, %p786_p1 }
 0x141   : > { %794 = shalt.err (!%p791_p3)
}
 0x142   : > { %s844_s20 = smov 64   ;;  %s845_s28 = smov 4  }
 0x143   : > { %648 = dma.vmem_to_hbm [thread:$0]  (%p1081_p11), %s1014_s29, 512, %s1019_s4, %s424_s16, %s844_s20, %s844_s20, %s845_s28  }
 0x144 PF: > { %s452_s17 = sand.u32 1, %s825_s12   ;;  %p1082_p7 = scmp.ne.s32.totalorder %s1071_s19, 0 }
 0x145   : > { %p1083_p9 = scmp.ge.s32.totalorder %s837_s15, 2  ;;  %s453_s22 = scalar_lea.sflag [#allocation4], %s452_s17 }
 0x147   : > { %p659_p10 = pnand %p1083_p9, %p1082_p7 }
 0x149   : > { %p660_p12 = pneg %p659_p10 }
 0x14b   : > { %820 = dma.done.wait (%p660_p12), %s453_s22, 512  }
 0x14c   : > { %822 = vsyncadd (%p660_p12), %s453_s22, 4294966784  ;;  %p17_p13 = scmp.ge.s32.totalorder %s920_s24, 4   ;;  %s1084_s12 = smov %s829_s13 }
 0x14d   : > { %s1085_s13 = smov %s833_s14  ;;  %s1086_s14 = smov %s940_s5 }
 0x14e   : > { %s1087_s15 = smov %s920_s24  ;;  %19 = sbr.rel (!%p17_p13) target bundleno = 6 (0x6), region = 81 }
 0x153   :  { %458 = vsyncpa [#allocation3], 1 }
 0x154   :  { %460 = vsyncpa [#allocation3 + $0x1], 1 }
 0x155   :  { %461 = vsyncpa [#allocation6], 1 }
 0x156   :  { %462 = vsyncpa [#allocation4], 1 }
 0x157   :  { %464 = vsyncpa [#allocation4 + $0x1], 1 }

</bundles_post_ra>
